<compile_context>
chip_gen: v7x
topology: tpu7x:2x2x1
jax: 0.10.0
libtpu: 0.0.40
codegen_flags: <defaults>
</compile_context>

<pallas_src>
import jax
import jax.numpy as jnp
import numpy as np
from jax.experimental import pallas as pl
from jax.experimental.pallas import tpu as pltpu


# ---------------------------------------------------------------------------
# One-time host-side constants / parameter re-layout (hoisted out of forward)
# ---------------------------------------------------------------------------
def _build_patch_index():
    """idx[t, off*144 + h*12 + w] = flat index into x (with a 1.0 appended at 784).

    t = p*5+q is the 5x5 conv tap, off = a*2+b the 2x2 maxpool offset and (h, w)
    the pooled spatial position, so each contiguous 144-lane column block holds
    the conv input evaluated at one pool offset.  Row 25 points at the appended
    constant 1.0 so the conv bias rides along inside the same matmul.
    """
    p, q = np.meshgrid(np.arange(5), np.arange(5), indexing="ij")
    tap_r = p.reshape(25, 1)
    tap_c = q.reshape(25, 1)
    a, b, h, w = np.meshgrid(np.arange(2), np.arange(2), np.arange(12),
                             np.arange(12), indexing="ij")
    win_r = (a + 2 * h).reshape(1, 576)
    win_c = (b + 2 * w).reshape(1, 576)
    idx = (tap_r + win_r) * 28 + (tap_c + win_c)                      # (25, 576)
    bias_row = np.full((1, 576), 28 * 28, dtype=np.int64)             # -> x_aug[784] == 1.0
    return np.concatenate([idx, bias_row], axis=0).astype(np.int32)   # (26, 576)


_PATCH_IDX = _build_patch_index()


def prepare_params(params):
    """One-time re-layout of the PyTorch-style parameters for the kernel."""
    wc, bc, w1, b1, w2, b2 = params
    # conv weights with the bias folded in as a 26th "tap"
    wc_aug = jnp.concatenate([wc.reshape(5, 25), bc.reshape(5, 1)], axis=1)      # (5, 26)
    # fc1 block layout: w1_blk[s, c*50 + o] = w1[o, c*144 + s]
    w1_blk = jnp.transpose(w1.reshape(50, 5, 144), (2, 1, 0)).reshape(144, 250)  # (144, 250)
    # everything small packed into one VMEM tile (sublane-aligned placements)
    pack = jnp.zeros((64, 64), jnp.float32)
    pack = pack.at[0:5, 0:26].set(wc_aug)    # conv weight + folded bias  (rows 0..4)
    pack = pack.at[6, 0:50].set(b1)          # fc1 bias                   (row 6)
    pack = pack.at[7, 0:10].set(b2)          # fc2 bias                   (row 7)
    pack = pack.at[8:58, 0:10].set(w2.T)     # fc2 weight, transposed     (rows 8..57)
    return w1_blk, pack


# ---------------------------------------------------------------------------
# Pallas kernel: exactly three MXU dots (conv+bias, fc1, fc2) + VPU/EUP epilogue
# ---------------------------------------------------------------------------
def another_net_kernel(patches_ref, w1_ref, pack_ref, out_ref):
    # Conv (+ bias) at all four 2x2-pool offsets in a single MXU dot:
    #   (5, 26) @ (26, 576) -> (5, 576); lanes [off*144:(off+1)*144] = pool offset `off`.
    conv = jnp.dot(pack_ref[0:5, 0:26], patches_ref[...],
                   preferred_element_type=jnp.float32)                # (5, 576)
    conv_max = jnp.maximum(jnp.maximum(conv[:, 0:144], conv[:, 144:288]),
                           jnp.maximum(conv[:, 288:432], conv[:, 432:576]))
    # tanh is strictly monotonic, so maxpool(tanh(conv + b)) == tanh(maxpool(conv + b))
    pooled = jnp.tanh(conv_max)                                       # (5, 144)

    # fc1 as one MXU dot in block layout: row c, lanes [c*50:(c+1)*50] of h_blocks
    # hold pooled[c, :] contracted with w1[:, c*144:(c+1)*144]; sum the five blocks.
    h_blocks = jnp.dot(pooled, w1_ref[...],
                       preferred_element_type=jnp.float32)            # (5, 250)
    hidden = (pack_ref[6:7, 0:50]                                     # b1
              + h_blocks[0:1, 0:50] + h_blocks[1:2, 50:100] + h_blocks[2:3, 100:150]
              + h_blocks[3:4, 150:200] + h_blocks[4:5, 200:250])
    hidden = jnp.tanh(hidden)                                         # (1, 50)

    logits = jnp.dot(hidden, pack_ref[8:58, 0:10],
                     preferred_element_type=jnp.float32) + pack_ref[7:8, 0:10]   # (1, 10)

    # softmax over the 10 logits (== softmax(dim=0) of the flattened torch output)
    z = logits - jnp.max(logits, axis=-1, keepdims=True)
    e = jnp.exp(z)
    out_ref[...] = e * pl.reciprocal(jnp.sum(e, axis=-1, keepdims=True))


@jax.jit
def another_net_forward(x, prepped):
    """x: (1, 1, 28, 28) f32 NCHW.  Returns (10,) softmax probabilities."""
    w1_blk, pack = prepped
    # single-gather im2col (+ appended 1.0 feeding the folded conv bias)
    x_aug = jnp.concatenate([x.reshape(-1), jnp.ones((1,), x.dtype)])   # (785,)
    patches = x_aug[_PATCH_IDX]                                         # (26, 576)

    vmem = pl.BlockSpec(memory_space=pltpu.MemorySpace.VMEM)
    out = pl.pallas_call(
        another_net_kernel,
        out_shape=jax.ShapeDtypeStruct((1, 10), jnp.float32),
        in_specs=[vmem, vmem, vmem],
        out_specs=vmem,
    )(patches, w1_blk, pack)
    return out[0]


# ---------------------------------------------------------------------------
# Pure-JAX reference matching the PyTorch forward exactly
# ---------------------------------------------------------------------------
@jax.jit
def reference_forward(x, params):
    wc, bc, w1, b1, w2, b2 = params
    conv = jax.lax.conv_general_dilated(
        x, wc, window_strides=(1, 1), padding='VALID',
        dimension_numbers=('NCHW', 'OIHW', 'NCHW'))      # (1, 5, 24, 24)
    conv = conv + bc.reshape(1, 5, 1, 1)
    act = jnp.tanh(conv)
    pooled = jax.lax.reduce_window(
        act, -jnp.inf, jax.lax.max,
        window_dimensions=(1, 1, 2, 2), window_strides=(1, 1, 2, 2),
        padding='VALID')                                  # (1, 5, 12, 12)
    flat = pooled.reshape(-1)                             # (720,)
    h = jnp.tanh(flat @ w1.T + b1)                        # (50,)
    logits = h @ w2.T + b2                                # (10,)
    return jax.nn.softmax(logits, axis=0)


def init_params(key):
    ks = jax.random.split(key, 6)
    wc = jax.random.normal(ks[0], (5, 1, 5, 5), jnp.float32) * 0.2
    bc = jax.random.normal(ks[1], (5,), jnp.float32) * 0.1
    w1 = jax.random.normal(ks[2], (50, 720), jnp.float32) * 0.05
    b1 = jax.random.normal(ks[3], (50,), jnp.float32) * 0.05
    w2 = jax.random.normal(ks[4], (10, 50), jnp.float32) * 0.1
    b2 = jax.random.normal(ks[5], (10,), jnp.float32) * 0.1
    return wc, bc, w1, b1, w2, b2


if __name__ == "__main__":
    root = jax.random.PRNGKey(0)
    k_x, k_p = jax.random.split(root)
    # torch.flatten (no dims) => batch must be 1 so that 5*12*12 == 720 features
    x = jax.random.normal(k_x, (1, 1, 28, 28), jnp.float32)
    params = init_params(k_p)
    prepped = prepare_params(params)          # one-time re-layout, hoisted out of forward

    out = jax.block_until_ready(another_net_forward(x, prepped))

    ref = jax.block_until_ready(reference_forward(x, params))
    np.testing.assert_allclose(np.asarray(out), np.asarray(ref),
                               rtol=1e-3, atol=1e-4)
    assert out.shape == (10,)
    print("KERNEL_OK")
</pallas_src>

<mosaic_0001>
module attributes {stable_mosaic.version = 11 : i64} {
  func.func @another_net_kernel(%arg0: memref<26x576xf32, #tpu.memory_space<vmem>>, %arg1: memref<144x250xf32, #tpu.memory_space<vmem>>, %arg2: memref<64x64xf32, #tpu.memory_space<vmem>>, %arg3: memref<1x10xf32, #tpu.memory_space<vmem>>) attributes {dimension_semantics = [], scalar_prefetch = 0 : i64, scratch_operands = 0 : i64, tpu.core_type = #tpu.core_type<tc>} {
    %c0 = arith.constant 0 : index
    %c0_0 = arith.constant 0 : index
    %0 = vector.load %arg2[%c0, %c0_0] : memref<64x64xf32, #tpu.memory_space<vmem>>, vector<5x26xf32>
    %c0_1 = arith.constant 0 : index
    %c0_2 = arith.constant 0 : index
    %1 = vector.load %arg0[%c0_1, %c0_2] : memref<26x576xf32, #tpu.memory_space<vmem>>, vector<26x576xf32>
    %cst = arith.constant dense<0.000000e+00> : vector<5x576xf32>
    %2 = tpu.matmul %0, %1, %cst {dimension_numbers = #tpu.dot_dimension_numbers<[1], [0], [0], [1], [0, 0, 1, 1], [], []>} : vector<5x26xf32>, vector<26x576xf32>, vector<5x576xf32> -> vector<5x576xf32>
    %3 = vector.extract_strided_slice %2 {offsets = [0, 0], sizes = [5, 144], strides = [1, 1]} : vector<5x576xf32> to vector<5x144xf32>
    %4 = vector.extract_strided_slice %2 {offsets = [0, 144], sizes = [5, 144], strides = [1, 1]} : vector<5x576xf32> to vector<5x144xf32>
    %5 = arith.maximumf %3, %4 : vector<5x144xf32>
    %6 = vector.extract_strided_slice %2 {offsets = [0, 288], sizes = [5, 144], strides = [1, 1]} : vector<5x576xf32> to vector<5x144xf32>
    %7 = vector.extract_strided_slice %2 {offsets = [0, 432], sizes = [5, 144], strides = [1, 1]} : vector<5x576xf32> to vector<5x144xf32>
    %8 = arith.maximumf %6, %7 : vector<5x144xf32>
    %9 = arith.maximumf %5, %8 : vector<5x144xf32>
    %10 = math.tanh %9 : vector<5x144xf32>
    %c0_3 = arith.constant 0 : index
    %c0_4 = arith.constant 0 : index
    %11 = vector.load %arg1[%c0_3, %c0_4] : memref<144x250xf32, #tpu.memory_space<vmem>>, vector<144x250xf32>
    %cst_5 = arith.constant dense<0.000000e+00> : vector<5x250xf32>
    %12 = tpu.matmul %10, %11, %cst_5 {dimension_numbers = #tpu.dot_dimension_numbers<[1], [0], [0], [1], [0, 0, 1, 1], [], []>} : vector<5x144xf32>, vector<144x250xf32>, vector<5x250xf32> -> vector<5x250xf32>
    %c6 = arith.constant 6 : index
    %c0_6 = arith.constant 0 : index
    %13 = vector.load %arg2[%c6, %c0_6] : memref<64x64xf32, #tpu.memory_space<vmem>>, vector<1x50xf32>
    %14 = vector.extract_strided_slice %12 {offsets = [0, 0], sizes = [1, 50], strides = [1, 1]} : vector<5x250xf32> to vector<1x50xf32>
    %15 = arith.addf %13, %14 : vector<1x50xf32>
    %16 = vector.extract_strided_slice %12 {offsets = [1, 50], sizes = [1, 50], strides = [1, 1]} : vector<5x250xf32> to vector<1x50xf32>
    %17 = arith.addf %15, %16 : vector<1x50xf32>
    %18 = vector.extract_strided_slice %12 {offsets = [2, 100], sizes = [1, 50], strides = [1, 1]} : vector<5x250xf32> to vector<1x50xf32>
    %19 = arith.addf %17, %18 : vector<1x50xf32>
    %20 = vector.extract_strided_slice %12 {offsets = [3, 150], sizes = [1, 50], strides = [1, 1]} : vector<5x250xf32> to vector<1x50xf32>
    %21 = arith.addf %19, %20 : vector<1x50xf32>
    %22 = vector.extract_strided_slice %12 {offsets = [4, 200], sizes = [1, 50], strides = [1, 1]} : vector<5x250xf32> to vector<1x50xf32>
    %23 = arith.addf %21, %22 : vector<1x50xf32>
    %24 = math.tanh %23 : vector<1x50xf32>
    %c8 = arith.constant 8 : index
    %c0_7 = arith.constant 0 : index
    %25 = vector.load %arg2[%c8, %c0_7] : memref<64x64xf32, #tpu.memory_space<vmem>>, vector<50x10xf32>
    %cst_8 = arith.constant dense<0.000000e+00> : vector<1x10xf32>
    %26 = tpu.matmul %24, %25, %cst_8 {dimension_numbers = #tpu.dot_dimension_numbers<[1], [0], [0], [1], [0, 0, 1, 1], [], []>} : vector<1x50xf32>, vector<50x10xf32>, vector<1x10xf32> -> vector<1x10xf32>
    %c7 = arith.constant 7 : index
    %c0_9 = arith.constant 0 : index
    %27 = vector.load %arg2[%c7, %c0_9] : memref<64x64xf32, #tpu.memory_space<vmem>>, vector<1x10xf32>
    %28 = arith.addf %26, %27 : vector<1x10xf32>
    %cst_10 = arith.constant dense<0xFF800000> : vector<1xf32>
    %29 = vector.multi_reduction <maximumf>, %28, %cst_10 [1] : vector<1x10xf32> to vector<1xf32>
    %30 = vector.shape_cast %29 : vector<1xf32> to vector<1x1xf32>
    %31 = vector.broadcast %30 : vector<1x1xf32> to vector<1x10xf32>
    %32 = arith.subf %28, %31 : vector<1x10xf32>
    %33 = math.exp %32 : vector<1x10xf32>
    %cst_11 = arith.constant dense<0.000000e+00> : vector<1xf32>
    %34 = vector.multi_reduction <add>, %33, %cst_11 [1] : vector<1x10xf32> to vector<1xf32>
    %35 = vector.shape_cast %34 : vector<1xf32> to vector<1x1xf32>
    %36 = tpu.reciprocal %35 : vector<1x1xf32> -> vector<1x1xf32>
    %37 = vector.broadcast %36 : vector<1x1xf32> to vector<1x10xf32>
    %38 = arith.mulf %33, %37 : vector<1x10xf32>
    %c0_12 = arith.constant 0 : index
    %c0_13 = arith.constant 0 : index
    %39 = vector.load %arg3[%c0_12, %c0_13] : memref<1x10xf32, #tpu.memory_space<vmem>>, vector<1x10xf32>
    tpu.vector_store %arg3[%c0_12, %c0_13], %38 {strides = array<i32>} : memref<1x10xf32, #tpu.memory_space<vmem>>, vector<1x10xf32>,
    return
  }
}

</mosaic_0001>

<bundles_post_ra>
// kernel: another_net_forward.1
= control target key start
LH: loop header
LB: loop body
LE: loop exit
PB: predicated region body
PF: predicated region fallthrough
CT: control target
= control target key end

     0   :  { %vm40_vm0 = vcmask 1041408   ;;  %v727_v7 = vmov 0.0   ;;  %vm728_vm1 = vmmov 1   ;;  %s1021_s0 = inlined_call_operand.vmem [shape: f32[26,576], index: 0, kind: input, shape index: {}]   ;;  %s1022_s1 = inlined_call_operand.vmem [shape: f32[144,250], index: 1, kind: input, shape index: {}]   ;;  %s1023_s2 = inlined_call_operand.vmem [shape: f32[64,64], index: 2, kind: input, shape index: {}]   ;;  %s1024_s3 = inlined_call_operand.hbm [shape: f32[1,10], index: 3, kind: output, shape index: {}]  }
   0x1   :  { %v17_v0 = vld [vmem:[%s1021_s0 + $0x8] sm:$0xff]  ;;  %v22_v1 = vld [vmem:[%s1021_s0 + $0x30] sm:$0xff]  ;;  %v16_v2 = vld [vmem:[%s1021_s0] sm:$0xff]  ;;  %120 = vmatprep.mubr.f32.mxu0 %v727_v7 }
   0x2   :  { %v610_v3 = vpack.c.bf16 %v22_v1, %v17_v0  ;;  %v21_v4 = vld [vmem:[%s1021_s0 + $0x28] sm:$0xff]  ;;  %v27_v5 = vld [vmem:[%s1021_s0 + $0x58] sm:$0xff]  ;;  %v32_v6 = vld [vmem:[%s1021_s0 + $0x80] sm:$0x3] }
   0x3   :  { %v612_v8 = vpack.c.bf16 %v21_v4, %v16_v2  ;;  %v614_v9 = vpack.c.bf16 %v32_v6, %v27_v5  ;;  %vm778_vm2 = vmpackc.low %vm40_vm0, %vm728_vm1  ;;  %v26_v11 = vld [vmem:[%s1021_s0 + $0x50] sm:$0xff]  ;;  %v31_v12 = vld [vmem:[%s1021_s0 + $0x78] sm:$0x3] }
   0x4   :  { %611 = vmatprep.subr.bf16.mxu0 %v610_v3  ;;  %v19_v13 = vld [vmem:[%s1021_s0 + $0x18] sm:$0xff]  ;;  %v24_v14 = vld [vmem:[%s1021_s0 + $0x40] sm:$0xff]  ;;  %v617_v15 = vpack.c.bf16 %v31_v12, %v26_v11  ;;  %v18_v17 = vld [vmem:[%s1021_s0 + $0x10] sm:$0xff] }
   0x5   :  { %613 = vmatpush1.bf16.msra.mxu0 %v612_v8  ;;  %v620_v16 = vpack.c.bf16 %v24_v14, %v19_v13  ;;  %v23_v18 = vld [vmem:[%s1021_s0 + $0x38] sm:$0xff]  ;;  %v29_v19 = vld [vmem:[%s1021_s0 + $0x68] sm:$0xff]  ;;  %v34_v20 = vld [vmem:[%s1021_s0 + $0x90] sm:$0x3] }
   0x6   :  { %616 = vmatprep.subr.msk.bf16.mxu0 %vm778_vm2, %v614_v9 }
   0x7   :  { %8 = vsyncpa [#allocation3], 0  ;;  %v15_v21 = vld [vmem:[%s1023_s2] sm:$0x1f]  ;;  %vm36_vm3 = vcmask 211968   ;;  %v622_v22 = vpack.c.bf16 %v23_v18, %v18_v17  ;;  %v624_v23 = vpack.c.bf16 %v34_v20, %v29_v19  ;;  %v25_v28 = vld [vmem:[%s1021_s0 + $0x48] sm:$0xff] }
   0x8   :  { %v28_v24 = vld [vmem:[%s1021_s0 + $0x60] sm:$0xff]  ;;  %v33_v25 = vld [vmem:[%s1021_s0 + $0x88] sm:$0x3]  ;;  %v729_v30 = vmov 0.0|0.0   ;;  %v30_v31 = vld [vmem:[%s1021_s0 + $0x70] sm:$0xff]  ;;  %vm730_vm4 = vmmov 0  }
   0x9   :  { %619 = vmatpush1.bf16.msk.msra.mxu0 %vm778_vm2, %v617_v15  ;;  %v627_v26 = vpack.c.bf16 %v33_v25, %v28_v24  ;;  %v20_v27 = vld [vmem:[%s1021_s0 + $0x20] sm:$0xff]  ;;  %v35_v32 = vld [vmem:[%s1021_s0 + $0x98] sm:$0x3]  ;;  %s731_s0 = smov 112   ;;  %v306_v36 = vld [vmem:[%s1022_s1 + $0x8] sm:$0xff]  ;;  %vm274_vm5 = vcmask 916480  }
   0xa   :  { %621 = vmatprep.subr.bf16.mxu0 %v620_v16  ;;  %v631_v29 = vpack.c.bf16 %v25_v28, %v20_v27  ;;  %v634_v33 = vpack.c.bf16 %v35_v32, %v30_v31  ;;  %v308_v37 = vld [vmem:[%s1022_s1 + $0x18] sm:$0xff]  ;;  %v305_v38 = vld [vmem:[%s1022_s1] sm:$0xff]  ;;  %v307_v41 = vld [vmem:[%s1022_s1 + $0x10] sm:$0xff]  ;;  %s732_s16 = smov 96   ;;  %vm297_vm6 = vcmask 785408   ;;  %vm341_vm7 = vcmask 130048  }
   0xb   :  { %v637_v40 = vpack.c.bf16 %v308_v37, %v306_v36  ;;  %v310_v42 = vld [vmem:[%s1022_s1 + $0x28] sm:$0xff]  ;;  %v312_v43 = vld [vmem:[%s1022_s1 + $0x38] sm:$0xff]  ;;  %v639_v45 = vpack.c.bf16 %v307_v41, %v305_v38  ;;  %v309_v47 = vld [vmem:[%s1022_s1 + $0x20] sm:$0xff]  ;;  %s733_s28 = smov 28   ;;  %s734_s29 = smov 78   ;;  %vm431_vm8 = vcmask 228352  }
   0xc   :  { %560 = vmatmul.mubr.msk.f32.vlgmr.msra.gmra.mrb[0].mxu0 %vm36_vm3, %v15_v21  ;;  %v641_v46 = vpack.c.bf16 %v312_v43, %v310_v42  ;;  %v311_v48 = vld [vmem:[%s1022_s1 + $0x30] sm:$0xff]  ;;  %v314_v49 = vld [vmem:[%s1022_s1 + $0x48] sm:$0xff]  ;;  %v316_v50 = vld [vmem:[%s1022_s1 + $0x58] sm:$0xff]  ;;  %s735_s30 = smov 106   ;;  %s736_s6 = smov 56   ;;  %vm454_vm9 = vcmask 408576  }
   0xd   :  { %623 = vmatpush1.bf16.msra.mxu0 %v622_v22  ;;  %191 = vmatprep.mubr.f32.mxu0 %v727_v7  ;;  %v643_v51 = vpack.c.bf16 %v311_v48, %v309_v47  ;;  %v645_v52 = vpack.c.bf16 %v316_v50, %v314_v49  ;;  %v313_v53 = vld [vmem:[%s1022_s1 + $0x40] sm:$0xff]  ;;  %v315_v54 = vld [vmem:[%s1022_s1 + $0x50] sm:$0xff]  ;;  %v318_v55 = vld [vmem:[%s1022_s1 + $0x68] sm:$0xff]  ;;  %vm531_vm10 = vcmask 73728   ;;  %s737_s11 = smov [#allocation2]  }
   0xe   :  { %626 = vmatprep.subr.msk.bf16.mxu0 %vm778_vm2, %v624_v23  ;;  %638 = vmatprep.subr.bf16.mxu1 %v637_v40  ;;  %v320_v56 = vld [vmem:[%s1022_s1 + $0x78] sm:$0xff]  ;;  %v647_v57 = vpack.c.bf16 %v315_v54, %v313_v53  ;;  %v317_v60 = vld [vmem:[%s1022_s1 + $0x60] sm:$0xff]  ;;  %v319_v61 = vld [vmem:[%s1022_s1 + $0x70] sm:$0xff]  ;;  %s550_s12 = sshll.u32 %s737_s11, 4  ;;  %s551_s12 = int_to_ptr.vmem [resolvable:$true] %s550_s12 }
   0xf   :  { %640 = vmatpush1.bf16.msra.mxu1 %v639_v45  ;;  %v649_v59 = vpack.c.bf16 %v320_v56, %v318_v55  ;;  %v322_v63 = vld [vmem:[%s1022_s1 + $0x88] sm:$0xff]  ;;  %v324_v0 = vld [vmem:[%s1022_s1 + $0x98] sm:$0xff]  ;;  %v651_v1 = vpack.c.bf16 %v319_v61, %v317_v60  ;;  %v321_v3 = vld [vmem:[%s1022_s1 + $0x80] sm:$0xff]  ;;  %p708_p1 = scmp.lt.s32.totalorder %s551_s12, %s551_s12 }
  0x10   :  { %642 = vmatprep.subr.bf16.mxu1 %v641_v46  ;;  %v653_v2 = vpack.c.bf16 %v324_v0, %v322_v63  ;;  %v323_v4 = vld [vmem:[%s1022_s1 + $0x90] sm:$0xff]  ;;  %v326_v5 = vld [vmem:[%s1022_s1 + $0xa8] sm:$0xff]  ;;  %v328_v6 = vld [vmem:[%s1022_s1 + $0xb8] sm:$0xff] }
  0x11   :  { %629 = vmatpush1.bf16.msk.msra.mxu0 %vm778_vm2, %v627_v26  ;;  %v655_v8 = vpack.c.bf16 %v323_v4, %v321_v3  ;;  %v657_v9 = vpack.c.bf16 %v328_v6, %v326_v5  ;;  %v325_v10 = vld [vmem:[%s1022_s1 + $0xa0] sm:$0xff]  ;;  %v327_v11 = vld [vmem:[%s1022_s1 + $0xb0] sm:$0xff]  ;;  %v330_v14 = vld [vmem:[%s1022_s1 + $0xc8] sm:$0xff] }
  0x12   :  { %630 = vmatprep.subr.bf16.mxu0 %v729_v30  ;;  %v659_v13 = vpack.c.bf16 %v327_v11, %v325_v10  ;;  %v332_v15 = vld [vmem:[%s1022_s1 + $0xd8] sm:$0xff]  ;;  %v329_v17 = vld [vmem:[%s1022_s1 + $0xc0] sm:$0xff]  ;;  %v331_v18 = vld [vmem:[%s1022_s1 + $0xd0] sm:$0xff] }
  0x13   :  { %644 = vmatpush1.bf16.msra.mxu1 %v643_v51  ;;  %v661_v16 = vpack.c.bf16 %v332_v15, %v330_v14  ;;  %v663_v20 = vpack.c.bf16 %v331_v18, %v329_v17  ;;  %v334_v23 = vld [vmem:[%s1022_s1 + $0xe8] sm:$0xff]  ;;  %v336_v24 = vld [vmem:[%s1022_s1 + $0xf8] sm:$0xff]  ;;  %v333_v25 = vld [vmem:[%s1022_s1 + $0xe0] sm:$0xff] }
  0x14   :  { %563 = vmatmul.mubr.msk.f32.vlgmr.msra.gmra.mrb[2].mxu0 %vm36_vm3, %v15_v21  ;;  %646 = vmatprep.subr.bf16.mxu1 %v645_v52  ;;  %v665_v26 = vpack.c.bf16 %v336_v24, %v334_v23  ;;  %v335_v27 = vld [vmem:[%s1022_s1 + $0xf0] sm:$0xff]  ;;  %v338_v28 = vld [vmem:[%s1022_s1 + $0x108] sm:$0xff]  ;;  %v448_v53 = vld [vmem:[%s1023_s2 + $0x18] sm:$0xff] }
  0x15   :  { %632 = vmatpush3.bf16.msra.mxu0 %v631_v29  ;;  %590 = vmatprep.mubr.msk.f32.mxu0 %vm730_vm4, %v727_v7  ;;  %v340_v29 = vld [vmem:[%s1022_s1 + $0x118] sm:$0xff]  ;;  %v667_v32 = vpack.c.bf16 %v335_v27, %v333_v25  ;;  %v339_v36 = vld [vmem:[%s1022_s1 + $0x110] sm:$0xff]  ;;  %v449_v54 = vld [vmem:[%s1023_s2 + $0x20] sm:$0xff] }
  0x16   :  { %633 = vmatprep.subr.bf16.mxu0 %v729_v30  ;;  %v451_v60 = vld [vmem:[%s1023_s2 + $0x30] sm:$0xff]  ;;  %v453_v14 = vld [vmem:[%s1023_s2 + $0x7] sm:$0x1] }
  0x17   :  { %648 = vmatpush1.bf16.msra.mxu1 %v647_v57 }
  0x18   :  { %650 = vmatprep.subr.bf16.mxu1 %v649_v59  ;;  %v450_v59 = vld [vmem:[%s1023_s2 + $0x28] sm:$0xff] }
  0x19   :  { %636 = vmatpush3.bf16.msk.msra.mxu0 %vm778_vm2, %v634_v33  ;;  %v669_v33 = vpack.c.bf16 %v340_v29, %v338_v28  ;;  %v680_v61 = vpack.c.bf16 %v451_v60, %v450_v59 }
  0x1a   :  { %673 = vmatprep.subr.bf16.mxu0 %v729_v30 }
  0x1b   :  { %652 = vmatpush1.bf16.msra.mxu1 %v651_v1  ;;  %v452_v1 = vld [vmem:[%s1023_s2 + $0x38] sm:$0x3] }
  0x1c   :  { %591 = vmatmul.mubr.msk.f32.vlgmr.msra.gmra.mrb[4].mxu0 %vm36_vm3, %v15_v21  ;;  %654 = vmatprep.subr.bf16.mxu1 %v653_v2  ;;  %v416_v2 = vld [vmem:[%s1023_s2 + $0x6] sm:$0x1] }
  0x1d   :  { %607 = vmatprep.mubr.msk.f32.mxu0 %vm730_vm4, %v727_v7 }
  0x1f   :  { %656 = vmatpush1.bf16.msra.mxu1 %v655_v8 }
  0x20   :  { %658 = vmatprep.subr.bf16.mxu1 %v657_v9 }
  0x23   :  { %660 = vmatpush1.bf16.msra.mxu1 %v659_v13 }
  0x24   :  { %662 = vmatprep.subr.bf16.mxu1 %v661_v16 }
  0x27   :  { %664 = vmatpush1.bf16.msra.mxu1 %v663_v20 }
  0x28   :  { %666 = vmatprep.subr.bf16.mxu1 %v665_v26 }
  0x2b   :  { %668 = vmatpush1.bf16.msra.mxu1 %v667_v32 }
  0x2c   :  { %670 = vmatprep.subr.bf16.mxu1 %v669_v33 }
  0xdf   :  { %v846_v34 = vpop.f32.mrb[0].mxu0 }
  0xe0   :  { %v848_v35 = vpop.f32.mrb[1].mxu0 }
  0xe1   :  { %270 = vrot.lane.b32.xlu1 %v848_v35, %s731_s0 }
  0xe7   :  { %v861_v39 = vpop.f32.mrb[2].mxu0 }
  0xe8   :  { %272 = vrot.lane.b32.xlu1 %v861_v39, %s731_s0  ;;  %v874_v44 = vpop.f32.mrb[3].mxu0 }
  0xe9   :  { %282 = vrot.lane.b32.xlu0 %v874_v44, %s731_s0 }
  0xef   :  { %v264_v58 = vpop.f32.mrb[4].mxu0 }
  0xf0   :  { %284 = vrot.lane.b32.xlu0 %v264_v58, %s731_s0  ;;  %v592_v62 = vpop.f32.mrb[5].mxu0  ;;  %v677_v58 = vpack.c.bf16 %v449_v54, %v448_v53  ;;  %s707_s0 = scalar_lea.vmem %s551_s12, 32 }
 0x153   :  { %v271_v12 = vpop.permute.xlu1 %270 }
 0x15a   :  { %v273_v19 = vpop.permute.xlu1 %272 }
 0x15b   :  { %v275_v21 = vsel %vm274_vm5, %v271_v12, %v273_v19  ;;  %v283_v31 = vpop.permute.xlu0 %282  ;;  %v279_v43 = vmax.f32 %v848_v35, %v273_v19  ;;  %v447_v35 = vld [vmem:[%s1023_s2 + $0x10] sm:$0xff] }
 0x15c   :  { %v278_v22 = vmax.f32 %v846_v34, %v275_v21  ;;  %v337_v34 = vld [vmem:[%s1022_s1 + $0x100] sm:$0xff] }
 0x15d   :  { %v671_v37 = vpack.c.bf16 %v339_v36, %v337_v34 }
 0x15f   :  { %672 = vmatpush1.bf16.msra.mxu1 %v671_v37 }
 0x162   :  { %v285_v38 = vpop.permute.xlu0 %284 }
 0x163   :  { %v286_v40 = vsel %vm274_vm5, %v283_v31, %v285_v38  ;;  %v290_v41 = vmax.f32 %v874_v44, %v285_v38 }
 0x164   :  { %v289_v42 = vmax.f32 %v861_v39, %v286_v40  ;;  %v446_v39 = vld [vmem:[%s1023_s2 + $0x8] sm:$0xff]  ;;  %s703_s2 = scalar_lea.vmem %s551_s12, 16 }
 0x165   :  { %295 = vrot.lane.b32.xlu1 %v290_v41, %s732_s16  ;;  %v674_v51 = vpack.c.bf16 %v447_v35, %v446_v39  ;;  %p704_p0 = scmp.ne.s32.totalorder %s551_s12, %s703_s2  ;;  %p709_p2 = scmp.lt.s32.totalorder %s707_s0, %s703_s2 }
 0x166   :  { %293 = vrot.lane.b32.xlu0 %v289_v42, %s732_s16 }
 0x167   :  { %675 = vmatpush3.bf16.msra.mxu0 %v674_v51  ;;  %p710_p3 = por %p709_p2, %p708_p1 }
 0x168   :  { %676 = vmatprep.subr.bf16.mxu0 %v729_v30 }
 0x169   :  { %p711_p4 = pnand %p710_p3, %p704_p0 }
 0x16b   :  { %678 = vmatpush3.bf16.msra.mxu0 %v677_v58 }
 0x16c   :  { %679 = vmatprep.subr.bf16.mxu0 %v729_v30 }
 0x16f   :  { %681 = vmatpush3.bf16.msra.mxu0 %v680_v61 }
 0x170   :  { %605 = vmatprep.subr.mxu0 %v727_v7 }
 0x173   :  { %606 = vmatpush3.msk.msra.mxu0 %vm40_vm0, %v452_v1 }
 0x1d7   :  { %v296_v45 = vpop.permute.xlu1 %295 }
 0x1d8   :  { %v302_v46 = vmax.f32 %v279_v43, %v296_v45  ;;  %v294_v47 = vpop.permute.xlu0 %293 }
 0x1d9   :  { %v298_v48 = vsel %vm297_vm6, %v294_v47, %v296_v45 }
 0x1da   :  { %693 = vtanh.f32 %v302_v46  ;;  %v301_v49 = vmax.f32 %v278_v22, %v298_v48 }
 0x1dc   :  { %695 = vtanh.f32 %v301_v49 }
 0x1e4   :  { %v694_v50 = vpop.eup %693 }
 0x1e5   :  { %566 = vmatprep.mubr.msk.f32.mxu1 %vm341_vm7, %v694_v50 }
 0x1e6   :  { %v696_v44 = vpop.eup %695 }
 0x1e7   :  { %410 = vmatmul.mubr.f32.vlgmr.msra.gmra.mrb[0].mxu1 %v696_v44 }
 0x2ba   :  { %v411_v52 = vpop.f32.mrb[0].mxu1 }
 0x2bb   :  { %v419_v55 = vrot.slane %v411_v52, 1  ;;  %v425_v56 = vrot.slane %v411_v52, 2  ;;  %v413_v57 = vpop.f32.mrb[1].mxu1  ;;  %v417_v4 = vadd.f32 %v416_v2, %v411_v52 }
 0x2bc   :  { %v426_v62 = vrot.slane %v413_v57, 2  ;;  %v435_v63 = vrot.slane %v413_v57, 3  ;;  %v440_v0 = vrot.slane %v413_v57, 4 }
 0x2bd   :  { %427 = vrot.lane.b32.xlu1 %v425_v56, %s733_s28  ;;  %420 = vrot.lane.b32.xlu0 %v419_v55, %s734_s29 }
 0x2c1   :  { %436 = vrot.lane.b32.xlu1 %v435_v63, %s735_s30  ;;  %429 = vrot.lane.b32.xlu0 %v426_v62, %s733_s28 }
 0x2c5   :  { %441 = vrot.lane.b32.xlu0 %v440_v0, %s736_s6 }
 0x32f   :  { %v421_v30 = vpop.permute.xlu0 %420  ;;  %v428_v3 = vpop.permute.xlu1 %427 }
 0x330   :  { %v423_v5 = vadd.f32 %v421_v30, %v417_v4 }
 0x333   :  { %v430_v6 = vpop.permute.xlu0 %429  ;;  %v437_v9 = vpop.permute.xlu1 %436 }
 0x334   :  { %v432_v8 = vsel %vm431_vm8, %v428_v3, %v430_v6 }
 0x335   :  { %v434_v7 = vadd.f32 %v432_v8, %v423_v5 }
 0x337   :  { %v439_v10 = vadd.f32 %v437_v9, %v434_v7  ;;  %v442_v11 = vpop.permute.xlu0 %441 }
 0x339   :  { %v444_v12 = vadd.f32 %v442_v11, %v439_v10 }
 0x33b   :  { %697 = vtanh.f32 %v444_v12 }
 0x345   :  { %v698_v13 = vpop.eup %697 }
 0x346   :  { %608 = vmatmul.mubr.msk.f32.vlgmr.msra.gmra.mrb[6].mxu0 %vm454_vm9, %v698_v13 }
 0x419   :  { %v527_v15 = vpop.f32.mrb[6].mxu0 }
 0x41a   :  { %v528_v16 = vadd.f32 %v527_v15, %v453_v14  ;;  %v609_v17 = vpop.f32.mrb[7].mxu0 }
 0x41c   :  { %v532_v18 = vsel %vm531_vm10, %v528_v16, -inf }
 0x41d   :  { %533 = vmax.xlane.f32.xlu1 %v532_v18 }
 0x4aa   :  { %v534_v19 = vpop.xlane.xlu1 %533 }
 0x4ab   :  { %v535_v20 = vsub.f32 %v528_v16, %v534_v19 }
 0x4ad   :  { %v536_v21 = vmul.f32 1.442695, %v535_v20 }
 0x4af   :  { %699 = vpow2.f32 %v536_v21 }
 0x4b9   :  { %v700_v22 = vpop.eup %699 }
 0x4ba   :  { %v538_v23 = vsel %vm531_vm10, %v700_v22, 0.0 }
 0x4bb   :  { %539 = vadd.xlane.f32.xlu0 %v538_v23 }
 0x548   :  { %v540_v24 = vpop.xlane.xlu0 %539 }
 0x549   :  { %701 = vrcp.f32 %v540_v24 }
 0x553   :  { %v702_v25 = vpop.eup %701 }
 0x554   :  { %v542_v26 = vmul.f32 %v702_v25, %v700_v22 }
 0x556   :  { %543 = vst.msk [vmem:[#allocation2] sm:$0x1] %vm531_vm10, %v542_v26 }
 0x557   :  { %714 = shalt.err (!%p711_p4)
}
 0x558   :  { %s715_s15 = scalar_lea.hbm %s1024_s3, 16 }
 0x559   :  { %p716_p5 = scmp.ne.s32.totalorder %s1024_s3, %s715_s15  ;;  %p719_p6 = scmp.lt.u32.totalorder %s715_s15, %s1024_s3 }
 0x55b   :  { %p721_p7 = pnand %p719_p6, %p716_p5 }
 0x55d   :  { %724 = shalt.err (!%p721_p7)
}
 0x55e   :  { %553 = dma.vmem_to_hbm [thread:$0]  %s551_s12, 16, %s1024_s3, [#allocation3]  }
 0x55f   :  { %725 = dma.done.wait [#allocation3], 16  }
 0x560   :  { %726 = vsyncadd [#allocation3], 4294967280 }
 0x561   :  { %557 = vsyncpa [#allocation3], 1 }

</bundles_post_ra>
